<compile_context>
chip_gen: v5e
topology: v5e:2x2
jax: 0.10.0
libtpu: 0.0.40
codegen_flags: <defaults>
</compile_context>

<pallas_src>
import functools

import numpy as np
import jax
import jax.numpy as jnp
from jax.experimental import pallas as pl
from jax.experimental.pallas import tpu as pltpu

BN_EPS = 1e-5


def _round_up(x, m):
    return ((x + m - 1) // m) * m


# --------------------------------------------------------------------------
# Exact PyTorch bilinear resize (align_corners=False), plain-JAX glue.
# --------------------------------------------------------------------------
def _interp_idx_w(in_size, out_size):
    scale = in_size / out_size
    dst = np.arange(out_size, dtype=np.float64)
    src = np.maximum(scale * (dst + 0.5) - 0.5, 0.0)
    idx0 = np.minimum(np.floor(src).astype(np.int32), in_size - 1)
    idx1 = np.minimum(idx0 + 1, in_size - 1)
    w = (src - idx0).astype(np.float32)
    return idx0, idx1, w


def _pt_bilinear_resize(img, out_h, out_w):
    """img: (B, C, Hi, Wi) -> (B, C, out_h, out_w), PyTorch align_corners=False."""
    _, _, hi, wi = img.shape
    iy0, iy1, wy = _interp_idx_w(hi, out_h)
    ix0, ix1, wx = _interp_idx_w(wi, out_w)
    wy = jnp.asarray(wy)[None, None, :, None]
    wx = jnp.asarray(wx)[None, None, None, :]
    rows = img[:, :, iy0, :] * (1.0 - wy) + img[:, :, iy1, :] * wy
    return rows[:, :, :, ix0] * (1.0 - wx) + rows[:, :, :, ix1] * wx


# --------------------------------------------------------------------------
# Pallas kernels.  Tiles are (C, T) with T (flattened spatial) on the lanes.
# --------------------------------------------------------------------------
def _pagfm_kernel(x_ref, y_ref, wx_ref, wy_ref, out_ref):
    x = x_ref[0]                                                   # (C, T)
    y = y_ref[0]                                                   # (C, T)
    x_k = jnp.dot(wx_ref[...], x, preferred_element_type=jnp.float32)  # (mid, T)
    y_q = jnp.dot(wy_ref[...], y, preferred_element_type=jnp.float32)  # (mid, T)
    sim = jax.nn.sigmoid(jnp.sum(x_k * y_q, axis=0, keepdims=True))    # (1, T)
    out_ref[0] = ((1.0 - sim) * x + sim * y).astype(out_ref.dtype)


def _pagfm_kernel_with_channel(x_ref, y_ref, wx_ref, wy_ref, wup_ref, out_ref):
    x = x_ref[0]                                                   # (C, T)
    y = y_ref[0]                                                   # (C, T)
    x_k = jnp.dot(wx_ref[...], x, preferred_element_type=jnp.float32)  # (mid, T)
    y_q = jnp.dot(wy_ref[...], y, preferred_element_type=jnp.float32)  # (mid, T)
    sim = jax.nn.sigmoid(jnp.dot(wup_ref[...], x_k * y_q,
                                 preferred_element_type=jnp.float32))  # (C, T)
    out_ref[0] = ((1.0 - sim) * x + sim * y).astype(out_ref.dtype)


# --------------------------------------------------------------------------
# Public wrapper: NCHW in / NCHW out (PyTorch convention).
# --------------------------------------------------------------------------
def pagfm_forward(x, y, params, *, with_channel=False, after_relu=False,
                  tile_hw=4096):
    b, c, h, w = x.shape
    mid = params["wx"].shape[0]
    bn_scale = 1.0 / np.sqrt(1.0 + BN_EPS)

    if after_relu:
        x = jax.nn.relu(x)
        y = jax.nn.relu(y)

    # Upsample y once; f_y (1x1 conv + eval-mode BN) commutes with bilinear
    # interpolation, so the kernel applies f_y to the upsampled y directly.
    y_up = _pt_bilinear_resize(y, h, w)

    hw = h * w
    x_flat = x.reshape(b, c, hw)
    y_flat = y_up.reshape(b, c, hw)

    t = _round_up(min(tile_hw, hw), 128)           # lane-dense hw tile
    padded_hw = _round_up(hw, t)
    if padded_hw != hw:
        pad = padded_hw - hw
        x_flat = jnp.pad(x_flat, ((0, 0), (0, 0), (0, pad)))
        y_flat = jnp.pad(y_flat, ((0, 0), (0, 0), (0, pad)))

    # Fold the eval-mode BatchNorm scale (1/sqrt(1+eps)) into the weights.
    wx_s = params["wx"] * bn_scale
    wy_s = params["wy"] * bn_scale

    data_spec = pl.BlockSpec((1, c, t), lambda bi, ti: (bi, 0, ti))
    w_spec = pl.BlockSpec((mid, c), lambda bi, ti: (0, 0))      # resident
    out_spec = pl.BlockSpec((1, c, t), lambda bi, ti: (bi, 0, ti))

    if with_channel:
        wup_s = params["wup"] * bn_scale
        kernel = _pagfm_kernel_with_channel
        in_specs = [data_spec, data_spec, w_spec, w_spec,
                    pl.BlockSpec((c, mid), lambda bi, ti: (0, 0))]
        args = (x_flat, y_flat, wx_s, wy_s, wup_s)
    else:
        kernel = _pagfm_kernel
        in_specs = [data_spec, data_spec, w_spec, w_spec]
        args = (x_flat, y_flat, wx_s, wy_s)

    out_flat = pl.pallas_call(
        kernel,
        out_shape=jax.ShapeDtypeStruct((b, c, padded_hw), jnp.float32),
        grid=(b, padded_hw // t),
        in_specs=in_specs,
        out_specs=out_spec,
        compiler_params=pltpu.CompilerParams(
            dimension_semantics=("parallel", "parallel")),
    )(*args)

    return out_flat[:, :, :hw].reshape(b, c, h, w)


# --------------------------------------------------------------------------
# Pure-JAX reference implementing the exact PyTorch forward (for checking).
# --------------------------------------------------------------------------
def pagfm_reference(x, y, params, *, with_channel=False, after_relu=False):
    _, _, h, w = x.shape
    bn_scale = 1.0 / np.sqrt(1.0 + BN_EPS)
    if after_relu:
        x = jax.nn.relu(x)
        y = jax.nn.relu(y)
    y_q = jnp.einsum('mc,bchw->bmhw', params["wy"], y) * bn_scale
    y_q = _pt_bilinear_resize(y_q, h, w)
    x_k = jnp.einsum('mc,bchw->bmhw', params["wx"], x) * bn_scale
    if with_channel:
        sim = jax.nn.sigmoid(
            jnp.einsum('cm,bmhw->bchw', params["wup"], x_k * y_q) * bn_scale)
    else:
        sim = jax.nn.sigmoid(jnp.sum(x_k * y_q, axis=1, keepdims=True))
    y_up = _pt_bilinear_resize(y, h, w)
    return (1.0 - sim) * x + sim * y_up


def init_params(key, in_channels, mid_channels):
    """Kaiming-normal (fan_in, relu) conv weights, matching weight_init()."""
    k1, k2, k3 = jax.random.split(key, 3)
    wx = jax.random.normal(k1, (mid_channels, in_channels), jnp.float32) * \
        np.sqrt(2.0 / in_channels)
    wy = jax.random.normal(k2, (mid_channels, in_channels), jnp.float32) * \
        np.sqrt(2.0 / in_channels)
    wup = jax.random.normal(k3, (in_channels, mid_channels), jnp.float32) * \
        np.sqrt(2.0 / mid_channels)
    return dict(wx=wx, wy=wy, wup=wup)


if __name__ == "__main__":
    B, C, MID = 2, 16, 32
    H = W = 16          # high-res branch (x)
    HY = WY = 8         # low-res branch (y), upsampled inside the forward

    key = jax.random.PRNGKey(0)
    kx, ky, kp = jax.random.split(key, 3)
    x = jax.random.normal(kx, (B, C, H, W), jnp.float32)
    y = jax.random.normal(ky, (B, C, HY, WY), jnp.float32)
    params = init_params(kp, C, MID)

    # Default configuration: with_channel=False, after_relu=False.
    out = pagfm_forward(x, y, params, with_channel=False, after_relu=False)
    out = jax.block_until_ready(out)
    ref = pagfm_reference(x, y, params, with_channel=False, after_relu=False)
    np.testing.assert_allclose(np.asarray(out), np.asarray(ref),
                               rtol=1e-3, atol=1e-3)

    # with_channel=True, after_relu=True configuration.
    out_ch = pagfm_forward(x, y, params, with_channel=True, after_relu=True)
    out_ch = jax.block_until_ready(out_ch)
    ref_ch = pagfm_reference(x, y, params, with_channel=True, after_relu=True)
    np.testing.assert_allclose(np.asarray(out_ch), np.asarray(ref_ch),
                               rtol=1e-3, atol=1e-3)

    print("KERNEL_OK")
</pallas_src>

<mosaic_0001>
module attributes {stable_mosaic.version = 11 : i64} {
  func.func @_pagfm_kernel(%arg0: i32, %arg1: i32, %arg2: memref<1x16x256xf32, #tpu.memory_space<vmem>>, %arg3: memref<1x16x256xf32, #tpu.memory_space<vmem>>, %arg4: memref<32x16xf32, #tpu.memory_space<vmem>>, %arg5: memref<32x16xf32, #tpu.memory_space<vmem>>, %arg6: memref<1x16x256xf32, #tpu.memory_space<vmem>>) attributes {dimension_semantics = [#tpu.dimension_semantics<parallel>, #tpu.dimension_semantics<parallel>], iteration_bounds = array<i64: 2, 1>, scalar_prefetch = 0 : i64, scratch_operands = 0 : i64, tpu.core_type = #tpu.core_type<tc>, window_params = [{transform_indices = @transform_0, window_bounds = array<i64: 1, 16, 256>}, {transform_indices = @transform_1, window_bounds = array<i64: 1, 16, 256>}, {pipeline_mode = #tpu.pipeline_mode<synchronous>, transform_indices = @transform_2, window_bounds = array<i64: 32, 16>}, {pipeline_mode = #tpu.pipeline_mode<synchronous>, transform_indices = @transform_3, window_bounds = array<i64: 32, 16>}, {transform_indices = @transform_4, window_bounds = array<i64: 1, 16, 256>}]} {
    %c0 = arith.constant 0 : index
    %c0_0 = arith.constant 0 : index
    %c0_1 = arith.constant 0 : index
    %0 = vector.load %arg2[%c0, %c0_0, %c0_1] : memref<1x16x256xf32, #tpu.memory_space<vmem>>, vector<1x16x256xf32>
    %1 = vector.shape_cast %0 : vector<1x16x256xf32> to vector<16x256xf32>
    %c0_2 = arith.constant 0 : index
    %c0_3 = arith.constant 0 : index
    %c0_4 = arith.constant 0 : index
    %2 = vector.load %arg3[%c0_2, %c0_3, %c0_4] : memref<1x16x256xf32, #tpu.memory_space<vmem>>, vector<1x16x256xf32>
    %3 = vector.shape_cast %2 : vector<1x16x256xf32> to vector<16x256xf32>
    %c0_5 = arith.constant 0 : index
    %c0_6 = arith.constant 0 : index
    %4 = vector.load %arg4[%c0_5, %c0_6] : memref<32x16xf32, #tpu.memory_space<vmem>>, vector<32x16xf32>
    %cst = arith.constant dense<0.000000e+00> : vector<32x256xf32>
    %5 = tpu.matmul %4, %1, %cst {dimension_numbers = #tpu.dot_dimension_numbers<[1], [0], [0], [1], [0, 0, 1, 1], [], []>} : vector<32x16xf32>, vector<16x256xf32>, vector<32x256xf32> -> vector<32x256xf32>
    %c0_7 = arith.constant 0 : index
    %c0_8 = arith.constant 0 : index
    %6 = vector.load %arg5[%c0_7, %c0_8] : memref<32x16xf32, #tpu.memory_space<vmem>>, vector<32x16xf32>
    %cst_9 = arith.constant dense<0.000000e+00> : vector<32x256xf32>
    %7 = tpu.matmul %6, %3, %cst_9 {dimension_numbers = #tpu.dot_dimension_numbers<[1], [0], [0], [1], [0, 0, 1, 1], [], []>} : vector<32x16xf32>, vector<16x256xf32>, vector<32x256xf32> -> vector<32x256xf32>
    %8 = arith.mulf %5, %7 : vector<32x256xf32>
    %cst_10 = arith.constant dense<0.000000e+00> : vector<256xf32>
    %9 = vector.multi_reduction <add>, %8, %cst_10 [0] : vector<32x256xf32> to vector<256xf32>
    %10 = vector.shape_cast %9 : vector<256xf32> to vector<1x256xf32>
    %11 = arith.negf %10 : vector<1x256xf32>
    %12 = math.exp %11 : vector<1x256xf32>
    %cst_11 = arith.constant 1.000000e+00 : f32
    %13 = vector.broadcast %cst_11 : f32 to vector<1x256xf32>
    %14 = arith.addf %13, %12 : vector<1x256xf32>
    %15 = arith.divf %13, %14 : vector<1x256xf32>
    %cst_12 = arith.constant 1.000000e+00 : f32
    %16 = vector.broadcast %cst_12 : f32 to vector<1x256xf32>
    %17 = arith.subf %16, %15 : vector<1x256xf32>
    %18 = vector.broadcast %17 : vector<1x256xf32> to vector<16x256xf32>
    %19 = arith.mulf %18, %1 : vector<16x256xf32>
    %20 = vector.broadcast %15 : vector<1x256xf32> to vector<16x256xf32>
    %21 = arith.mulf %20, %3 : vector<16x256xf32>
    %22 = arith.addf %19, %21 : vector<16x256xf32>
    %c0_13 = arith.constant 0 : index
    %c0_14 = arith.constant 0 : index
    %c0_15 = arith.constant 0 : index
    %23 = vector.load %arg6[%c0_13, %c0_14, %c0_15] : memref<1x16x256xf32, #tpu.memory_space<vmem>>, vector<1x16x256xf32>
    %24 = vector.shape_cast %23 : vector<1x16x256xf32> to vector<16x256xf32>
    %25 = vector.shape_cast %22 : vector<16x256xf32> to vector<1x16x256xf32>
    tpu.vector_store %arg6[%c0_13, %c0_14, %c0_15], %25 {strides = array<i32>} : memref<1x16x256xf32, #tpu.memory_space<vmem>>, vector<1x16x256xf32>,
    return
  }
  func.func @transform_0(%arg0: i32, %arg1: i32) -> (i32, i32, i32) {
    %c0_i32 = arith.constant 0 : i32
    %c0_i32_0 = arith.constant 0 : i32
    return %arg0, %c0_i32, %arg1 : i32, i32, i32
  }
  func.func @transform_1(%arg0: i32, %arg1: i32) -> (i32, i32, i32) {
    %c0_i32 = arith.constant 0 : i32
    %c0_i32_0 = arith.constant 0 : i32
    return %arg0, %c0_i32, %arg1 : i32, i32, i32
  }
  func.func @transform_2(%arg0: i32, %arg1: i32) -> (i32, i32) {
    %c0_i32 = arith.constant 0 : i32
    %c0_i32_0 = arith.constant 0 : i32
    %c0_i32_1 = arith.constant 0 : i32
    return %c0_i32, %c0_i32_0 : i32, i32
  }
  func.func @transform_3(%arg0: i32, %arg1: i32) -> (i32, i32) {
    %c0_i32 = arith.constant 0 : i32
    %c0_i32_0 = arith.constant 0 : i32
    %c0_i32_1 = arith.constant 0 : i32
    return %c0_i32, %c0_i32_0 : i32, i32
  }
  func.func @transform_4(%arg0: i32, %arg1: i32) -> (i32, i32, i32) {
    %c0_i32 = arith.constant 0 : i32
    %c0_i32_0 = arith.constant 0 : i32
    return %arg0, %c0_i32, %arg1 : i32, i32, i32
  }
}

</mosaic_0001>

<bundles_post_ra>
// kernel: tpu_custom_call.1
= control target key start
LH: loop header
LB: loop body
LE: loop exit
PB: predicated region body
PF: predicated region fallthrough
CT: control target
= control target key end

     0   :  { %9 = vsyncpa [#allocation3], 0  ;;  %s1092_s0 = inlined_call_operand.vmem [shape: f32[2,16,256], index: 0, kind: input, shape index: {}]   ;;  %s1093_s1 = inlined_call_operand.hbm [shape: f32[2,16,256], index: 1, kind: input, shape index: {}]   ;;  %s1094_s2 = inlined_call_operand.vmem [shape: f32[32,16], index: 2, kind: input, shape index: {}]   ;;  %s1095_s3 = inlined_call_operand.vmem [shape: f32[32,16], index: 3, kind: input, shape index: {}]   ;;  %s1096_s4 = inlined_call_operand.hbm [shape: f32[2,16,256], index: 4, kind: output, shape index: {}]  }
   0x1   :  { %11 = vsyncpa [#allocation3 + $0x1], 0 }
   0x2   :  { %12 = vsyncpa [#allocation4], 0 }
   0x3   :  { %14 = vsyncpa [#allocation4 + $0x1], 0  ;;  %s891_s15 = smov 0   ;;  %s893_s16 = smov 0  }
   0x4   :  { %s895_s17 = smov 0   ;;  %s897_s18 = smov 0  }
   0x5   :  { %s899_s19 = smov 0   ;;  %s901_s20 = smov 0  }
   0x6 LB: > { %s636_s21 = sadd.s32 4294967295, %s860_s20   ;;  %s637_s22 = sadd.s32 4294967294, %s860_s20   ;;  %s860_s20 = sphi %s901_s20, %s20_s20   ;;  %s856_s19 = sphi %s899_s19, %s1105_s19   ;;  %s852_s18 = sphi %s897_s18, %s1104_s18   ;;  %s848_s17 = sphi %s895_s17, %s1103_s17   ;;  %s844_s16 = sphi %s893_s16, %s1102_s16   ;;  %s840_s15 = sphi %s891_s15, %s1101_s15  }
   0x7   : > { %s32_s23 = sadd.s32 1, %s856_s19  ;;  %s69_s24 = sadd.s32 1, %s848_s17 }
   0x8   : > { %p34_p0 = scmp.ge.s32.totalorder %s32_s23, 2  ;;  %p76_p1 = scmp.ne.s32.totalorder %s848_s17, %s844_s16 }
   0x9   : > { %p77_p2 = scmp.eq.s32.totalorder %s860_s20, 0  ;;  %p82_p3 = scmp.ne.s32.totalorder %s844_s16, %s840_s15 }
   0xa   : > { %s1107_s23 = smov (%p34_p0, %s32_s23), 0  ;;  %p83_p5 = scmp.eq.s32.totalorder %s636_s21, 0 }
   0xb   : > { %p932_p4 = por %p77_p2, %p76_p1  ;;  %s64_s26 = ssub.s32 %s856_s19, %s1107_s23 }
   0xc   : > { %p150_p6 = scmp.eq.s32.totalorder %s636_s21, 1  ;;  %p67_p7 = scmp.eq.s32.totalorder %s64_s26, 0 }
   0xd   : > { %p938_p8 = por %p83_p5, %p82_p3  ;;  %p156_p10 = scmp.eq.s32.totalorder %s637_s22, 1 }
   0xe   : > { %p942_p9 = por %p150_p6, %p76_p1  ;;  %p639_p12 = scmp.ge.s32.totalorder %s860_s20, 2 }
   0xf   : > { %s947_s29 = scalar_select %p67_p7, %s848_s17, %s69_s24  }
  0x10   : > { %p949_p11 = por %p156_p10, %p82_p3  ;;  %p686_p13 = scmp.lt.s32.totalorder %s860_s20, 2 }
  0x11   : > { %s195_s5 = sand.u32 1, %s848_s17   ;;  %s671_s7 = sshll.u32 %s856_s19, 5 }
  0x12   : > { %s640_s6 = sshll.u32 %s195_s5, 5  ;;  %s206_s10 = scalar_lea.hbm %s1093_s1, %s671_s7 }
  0x13   : > { %s199_s11 = scalar_lea.vmem [#allocation2], %s640_s6  ;;  %s207_s13 = sshll.u32 %s206_s10, 4  ;;  %s208_s13 = int_to_ptr.hbm [resolvable:$true] %s207_s13 }
  0x14   : > { %s209_s12 = sshll.u32 %s199_s11, 4  ;;  %p679_p0 = pnand %p686_p13, %p932_p4  ;;  %s210_s12 = int_to_ptr.vmem [resolvable:$true] %s209_s12 }
  0x15   : > { %p643_p1 = scmp.ge.s32.totalorder %s860_s20, 1  ;;  %s196_s14 = scalar_lea.sflag [#allocation3], %s195_s5 }
  0x16   : > { %s862_s21 = smov 256   ;;  %s863_s22 = smov 16  }
  0x17   : > { %681 = dma.hbm_to_vmem [thread:$0]  (!%p679_p0), %s208_s13, 512, %s210_s12, %s196_s14, %s862_s21, %s862_s21, %s863_s22  }
  0x18   : > { %p217_p2 = scmp.lt.s32.totalorder %s860_s20, 3 }
  0x1a   : > { %p218_p3 = pnand %p643_p1, %p217_p2 }
  0x1b   : > { %s965_s24 = sand.u32 (!%p218_p3), 1, %s844_s16  }
  0x1c   : > { %221 = sbr.rel (%p218_p3) target bundleno = 252 (0xfc), region = 36  ;;  %s644_s26 = sshll.u32 (!%p218_p3), %s965_s24, 5 }
  0x1d   : > { %s224_s6 = scalar_lea.sflag (!%p218_p3), [#allocation3], %s965_s24  ;;  %s227_s25 = scalar_lea.vmem (!%p218_p3), [#allocation2], %s644_s26 }
  0x21   : > { %831 = dma.done.wait (%p938_p8), %s224_s6, 512  }
  0x22   : > { %833 = vsyncadd (%p938_p8), %s224_s6, 4294966784  ;;  %p263_p4 = scmp.lt.s32.totalorder %s852_s18, 1  ;;  %v980_v0 = vld [vmem:[%s227_s25 + $0x10] sm:$0xff]  ;;  %v982_v1 = vld [vmem:[%s227_s25 + $0x18] sm:$0xff]  ;;  %vm286_vm0 = vcmask 130048   ;;  %s673_s12 = sshll.u32 %s852_s18, 5 }
  0x23   : > { %v984_v2 = vld [vmem:[%s227_s25] sm:$0xff]  ;;  %387 = vmatpush.msra.mxu2 %v980_v0  ;;  %416 = vmatpush.msra.mxu3 %v982_v1  ;;  %v988_v3 = vld [vmem:[%s227_s25 + $0x8] sm:$0xff]  ;;  %v359_v12 = vld [vmem:[%s1095_s3 + $0x10] sm:$0xff]  ;;  %s527_s21 = scalar_lea.hbm %s1096_s4, %s673_s12  ;;  %s514_s25 = scalar_lea.sflag [#allocation4], %s965_s24 }
  0x24   : > { %s264_s5 = scalar_select %p263_p4, %s852_s18, 1  ;;  %v357_v4 = vld [vmem:[%s1095_s3] sm:$0xff]  ;;  %v358_v10 = vld [vmem:[%s1095_s3 + $0x8] sm:$0xff]  ;;  %v284_v13 = vld [vmem:[%s1094_s2 + $0x10] sm:$0xff] }
  0x25   : > { %388 = vmatpush.msra.mxu2 %v984_v2  ;;  %417 = vmatpush.msra.mxu3 %v988_v3  ;;  %v282_v8 = vld [vmem:[%s1094_s2] sm:$0xff]  ;;  %v283_v11 = vld [vmem:[%s1094_s2 + $0x8] sm:$0xff]  ;;  %v360_v14 = vld [vmem:[%s1095_s3 + $0x18] sm:$0xff]  ;;  %s261_s18 = scalar_lea.vmem [#allocation5], %s644_s26  ;;  %s530_s6 = sshll.u32 %s527_s21, 4  ;;  %s531_s6 = int_to_ptr.hbm [resolvable:$true] %s530_s6 }
  0x26   : > { %s672_s7 = sshll.u32 %s264_s5, 5  ;;  %656 = vmatmul.msk.f32.vlgmr.msra.gmra.mxu2 %vm286_vm0, %v357_v4  ;;  %660 = vmatmul.msk.f32.vlgmr.msra.gmra.mxu3 %vm286_vm0, %v357_v4  ;;  %v285_v15 = vld [vmem:[%s1094_s2 + $0x18] sm:$0xff]  ;;  %s528_s22 = sshll.u32 %s261_s18, 4  ;;  %s529_s22 = int_to_ptr.vmem [resolvable:$true] %s528_s22 }
  0x27   : > { %s270_s10 = scalar_lea.vmem %s1092_s0, %s672_s7  ;;  %s792_s5 = sshra.s32 %s531_s6, 4  ;;  %s793_s5 = int_to_ptr.hbm [resolvable:$true] %s792_s5 }
  0x28   : > { %v993_v5 = vld [vmem:[%s270_s10 + $0x10] sm:$0xff]  ;;  %v996_v6 = vld [vmem:[%s270_s10 + $0x18] sm:$0xff]  ;;  %v998_v7 = vld [vmem:[%s270_s10] sm:$0xff]  ;;  %s794_s7 = scalar_lea.hbm %s793_s5, 32  ;;  %s798_s9 = scalar_lea.hbm %s1096_s4, 64 }
  0x29   : > { %313 = vmatpush.msra.mxu0 %v993_v5  ;;  %v1007_v9 = vld [vmem:[%s270_s10 + $0x8] sm:$0xff]  ;;  %342 = vmatpush.msra.mxu1 %v996_v6  ;;  %p795_p5 = scmp.ne.s32.totalorder %s793_s5, %s794_s7  ;;  %p799_p8 = scmp.lt.s32.totalorder %s793_s5, %s1096_s4 }
  0x2a   : > { %p800_p10 = scmp.lt.s32.totalorder %s798_s9, %s794_s7 }
  0x2b   : > { %314 = vmatpush.msra.mxu0 %v998_v7  ;;  %343 = vmatpush.msra.mxu1 %v1007_v9  ;;  %p796_p6 = pnand %p795_p5, %p942_p9 }
  0x2c   : > { %648 = vmatmul.msk.f32.vlgmr.msra.gmra.mxu0 %vm286_vm0, %v282_v8  ;;  %652 = vmatmul.msk.f32.vlgmr.msra.gmra.mxu1 %vm286_vm0, %v282_v8  ;;  %p801_p13 = por %p800_p10, %p799_p8 }
  0x2d   : > { %p797_p7 = pneg %p796_p6 }
  0x2e   : > { %657 = vmatmul.msk.f32.gmra.mxu2 %vm286_vm0, %v358_v10  ;;  %661 = vmatmul.msk.f32.gmra.mxu3 %vm286_vm0, %v358_v10 }
  0x2f   : > { %p802_p0 = pnand %p801_p13, %p797_p7 }
  0x34   : > { %649 = vmatmul.msk.f32.gmra.mxu0 %vm286_vm0, %v283_v11  ;;  %653 = vmatmul.msk.f32.gmra.mxu1 %vm286_vm0, %v283_v11 }
  0x36   : > { %658 = vmatmul.msk.f32.gmra.mxu2 %vm286_vm0, %v359_v12  ;;  %662 = vmatmul.msk.f32.gmra.mxu3 %vm286_vm0, %v359_v12 }
  0x3c   : > { %650 = vmatmul.msk.f32.gmra.mxu0 %vm286_vm0, %v284_v13  ;;  %654 = vmatmul.msk.f32.gmra.mxu1 %vm286_vm0, %v284_v13 }
  0x3e   : > { %659 = vmatmul.msk.f32.gmra.mxu2 %vm286_vm0, %v360_v14  ;;  %663 = vmatmul.msk.f32.gmra.mxu3 %vm286_vm0, %v360_v14 }
  0x44   : > { %651 = vmatmul.msk.f32.gmra.mxu0 %vm286_vm0, %v285_v15  ;;  %655 = vmatmul.msk.f32.gmra.mxu1 %vm286_vm0, %v285_v15 }
  0xa9   : > { %v316_v16 = vpop.f32.mrf.mxu0  ;;  %v345_v17 = vpop.f32.mrf.mxu1 }
  0xaa   : > { %v390_v18 = vpop.f32.mrf.mxu2  ;;  %v419_v19 = vpop.f32.mrf.mxu3 }
  0xab   : > { %v431_v30 = vmul.f32 %v390_v18, %v316_v16  ;;  %v432_v31 = vmul.f32 %v419_v19, %v345_v17 }
  0xb1   : > { %v319_v20 = vpop.f32.mrf.mxu0  ;;  %v348_v21 = vpop.f32.mrf.mxu1 }
  0xb2   : > { %v393_v22 = vpop.f32.mrf.mxu2  ;;  %v422_v23 = vpop.f32.mrf.mxu3 }
  0xb3   : > { %v433_v28 = vmul.f32 %v393_v22, %v319_v20  ;;  %v434_v29 = vmul.f32 %v422_v23, %v348_v21 }
  0xb5   : > { %v439_v36 = vadd.f32 %v433_v28, %v431_v30  ;;  %v448_v37 = vadd.f32 %v434_v29, %v432_v31 }
  0xb9   : > { %v322_v24 = vpop.f32.mrf.mxu0  ;;  %v351_v25 = vpop.f32.mrf.mxu1 }
  0xba   : > { %v396_v26 = vpop.f32.mrf.mxu2  ;;  %v425_v27 = vpop.f32.mrf.mxu3 }
  0xbb   : > { %v435_v32 = vmul.f32 %v396_v26, %v322_v24  ;;  %v436_v33 = vmul.f32 %v425_v27, %v351_v25 }
  0xbd   : > { %v440_v40 = vadd.f32 %v439_v36, %v435_v32  ;;  %v449_v41 = vadd.f32 %v448_v37, %v436_v33 }
  0xc1   : > { %v325_v34 = vpop.f32.mrf.mxu0  ;;  %v354_v35 = vpop.f32.mrf.mxu1 }
  0xc2   : > { %v399_v38 = vpop.f32.mrf.mxu2  ;;  %v428_v39 = vpop.f32.mrf.mxu3 }
  0xc3   : > { %v437_v42 = vmul.f32 %v399_v38, %v325_v34  ;;  %v438_v43 = vmul.f32 %v428_v39, %v354_v35 }
  0xc5   : > { %v441_v44 = vadd.f32 %v440_v40, %v437_v42  ;;  %v450_v45 = vadd.f32 %v449_v41, %v438_v43 }
  0xc7   : > { %v442_v46 = vrot.slane %v441_v44, 4  ;;  %v451_v47 = vrot.slane %v450_v45, 4 }
  0xc9   : > { %v443_v48 = vadd.f32 %v442_v46, %v441_v44  ;;  %v452_v49 = vadd.f32 %v451_v47, %v450_v45 }
  0xcb   : > { %v444_v50 = vrot.slane %v443_v48, 2  ;;  %v453_v51 = vrot.slane %v452_v49, 2 }
  0xcd   : > { %v445_v52 = vadd.f32 %v444_v50, %v443_v48  ;;  %v454_v53 = vadd.f32 %v453_v51, %v452_v49 }
  0xcf   : > { %v446_v54 = vrot.slane %v445_v52, 1  ;;  %v455_v55 = vrot.slane %v454_v53, 1 }
  0xd1   : > { %v447_v56 = vadd.f32 %v446_v54, %v445_v52  ;;  %v456_v57 = vadd.f32 %v455_v55, %v454_v53 }
  0xd3   : > { %v664_v58 = vmul.f32 -1.442695, %v447_v56  ;;  %v665_v59 = vmul.f32 -1.442695, %v456_v57 }
  0xd5   : > { %740 = vpow2.f32 %v664_v58 }
  0xd6   : > { %742 = vpow2.f32 %v665_v59 }
  0xdb   : > { %v741_v60 = vpop.eup %740 }
  0xdc   : > { %v743_v61 = vpop.eup %742  ;;  %v463_v62 = vadd.f32 1.0, %v741_v60 }
  0xdd   : > { %v464_v63 = vadd.f32 1.0, %v743_v61 }
  0xde   : > { %744 = vrcp.f32 %v463_v62  ;;  %v476_v13 = vand.u32 2147483648, %v463_v62  ;;  %v474_v16 = vand.u32 2147483647, %v463_v62  ;;  %vm470_vm3 = vweird.f32 %v463_v62 }
  0xdf   : > { %746 = vrcp.f32 %v464_v63  ;;  %v491_v17 = vand.u32 2147483648, %v464_v63  ;;  %v489_v19 = vand.u32 2147483647, %v464_v63  ;;  %vm485_vm5 = vweird.f32 %v464_v63 }
  0xe0   : > { %v477_v21 = vor.u32 1.1754944e-38, %v476_v13  ;;  %vm475_vm6 = vcmp.eq.f32.partialorder %v474_v16, 8.507059e+37 }
  0xe1   : > { %v492_v24 = vor.u32 1.1754944e-38, %v491_v17  ;;  %vm490_vm8 = vcmp.eq.f32.partialorder %v489_v19, 8.507059e+37 }
  0xe4   : > { %v745_v4 = vpop.eup %744 }
  0xe5   : > { %v747_v8 = vpop.eup %746  ;;  %v466_v10 = vmul.f32 %v745_v4, %v463_v62  ;;  %vm471_vm1 = vweird.f32 %v745_v4 }
  0xe6   : > { %v481_v11 = vmul.f32 %v747_v8, %v464_v63  ;;  %vm486_vm2 = vweird.f32 %v747_v8  ;;  %vm472_vm4 = vmor %vm470_vm3, %vm471_vm1 }
  0xe7   : > { %v467_v12 = vsub.f32 1.0, %v466_v10  ;;  %vm487_vm7 = vmor %vm485_vm5, %vm486_vm2 }
  0xe8   : > { %v482_v14 = vsub.f32 1.0, %v481_v11 }
  0xe9   : > { %v468_v15 = vmul.f32 %v745_v4, %v467_v12 }
  0xea   : > { %v483_v18 = vmul.f32 %v747_v8, %v482_v14 }
  0xeb   : > { %v469_v20 = vadd.f32 %v745_v4, %v468_v15 }
  0xec   : > { %v484_v22 = vadd.f32 %v747_v8, %v483_v18 }
  0xed   : > { %v473_v23 = vsel %vm472_vm4, %v745_v4, %v469_v20 }
  0xee   : > { %v478_v25 = vsel %vm475_vm6, %v477_v21, %v473_v23  ;;  %v488_v26 = vsel %vm487_vm7, %v747_v8, %v484_v22 }
  0xef   : > { %v495_v27 = vsub.f32 1.0, %v478_v25  ;;  %v493_v28 = vsel %vm490_vm8, %v492_v24, %v488_v26  ;;  %v501_v32 = vmul.f32 %v478_v25, %v984_v2  ;;  %v503_v33 = vmul.f32 %v478_v25, %v980_v0 }
  0xf0   : > { %v496_v29 = vsub.f32 1.0, %v493_v28  ;;  %v502_v36 = vmul.f32 %v493_v28, %v988_v3  ;;  %v504_v37 = vmul.f32 %v493_v28, %v982_v1 }
  0xf1   : > { %v497_v30 = vmul.f32 %v495_v27, %v998_v7  ;;  %v499_v31 = vmul.f32 %v495_v27, %v993_v5 }
  0xf2   : > { %v498_v34 = vmul.f32 %v496_v29, %v1007_v9  ;;  %v500_v35 = vmul.f32 %v496_v29, %v996_v6 }
  0xf3   : > { %v505_v7 = vadd.f32 %v501_v32, %v497_v30  ;;  %v507_v5 = vadd.f32 %v503_v33, %v499_v31 }
  0xf4   : > { %v506_v38 = vadd.f32 %v502_v36, %v498_v34  ;;  %v508_v2 = vadd.f32 %v504_v37, %v500_v35 }
  0xf5   : > { %509 = vst [vmem:[%s261_s18] sm:$0xff] %v505_v7 }
  0xf6   : > { %510 = vst [vmem:[%s261_s18 + $0x8] sm:$0xff] %v506_v38 }
  0xf7   : > { %511 = vst [vmem:[%s261_s18 + $0x10] sm:$0xff] %v507_v5 }
  0xf8   : > { %512 = vst [vmem:[%s261_s18 + $0x18] sm:$0xff] %v508_v2 }
  0xf9   : > { %805 = shalt.err (!%p802_p0)
}
  0xfa   : > { %s864_s24 = smov 256   ;;  %s865_s11 = smov 16  }
  0xfb   : > { %676 = dma.vmem_to_hbm [thread:$0]  (%p942_p9), %s529_s22, 512, %s531_s6, %s514_s25, %s864_s24, %s864_s24, %s865_s11  }
  0xfc PF: > { %s545_s12 = sand.u32 1, %s840_s15   ;;  %p683_p1 = pnand %p639_p12, %p949_p11 }
  0xfd   : > { %s546_s13 = scalar_lea.sflag [#allocation4], %s545_s12 }
  0xfe   : > { %p684_p2 = pneg %p683_p1 }
 0x100   : > { %835 = dma.done.wait (%p684_p2), %s546_s13, 512  }
 0x101   : > { %837 = vsyncadd (%p684_p2), %s546_s13, 4294966784  ;;  %s20_s20 = sadd.s32 1, %s860_s20   ;;  %s1101_s15 = smov %s844_s16 }
 0x102   : > { %p17_p3 = scmp.ge.s32.totalorder %s20_s20, 4   ;;  %s1102_s16 = smov %s848_s17 }
 0x103   : > { %s1103_s17 = smov %s947_s29  ;;  %s1104_s18 = smov %s856_s19 }
 0x104   : > { %s1105_s19 = smov %s1107_s23  ;;  %19 = sbr.rel (!%p17_p3) target bundleno = 6 (0x6), region = 84 }
 0x109   :  { %552 = vsyncpa [#allocation3], 1 }
 0x10a   :  { %554 = vsyncpa [#allocation3 + $0x1], 1 }
 0x10b   :  { %555 = vsyncpa [#allocation4], 1 }
 0x10c   :  { %557 = vsyncpa [#allocation4 + $0x1], 1 }

</bundles_post_ra>
